<compile_context>
chip_gen: v7x
topology: tpu7x:2x2x1
jax: 0.10.0
libtpu: 0.0.40
codegen_flags: <defaults>
</compile_context>

<pallas_src>
import functools

import jax
import jax.numpy as jnp
from jax import lax
from jax.experimental import pallas as pl
from jax.experimental.pallas import tpu as pltpu

LANE = 128


def _round_up(x, m):
    return ((x + m - 1) // m) * m


# --------------------------------------------------------------------------------------
# Pallas kernel: whole-sequence LSTM recurrence in a single invocation.
# --------------------------------------------------------------------------------------
def _lstm_recurrence_kernel(xg_ref, whh_ref, h0_ref, c0_ref,
                            out_ref, hn_ref, cn_ref, *, seq_len, hp):
    """
    xg_ref  : VMEM f32[S, 4*Hp]   precomputed input-side gate pre-activations
                                  (embedding[tok] @ W_ih^T + b_ih + b_hh), gate-padded layout
    whh_ref : VMEM f32[Hp, 4*Hp]  W_hh^T, zero-padded, gate-padded layout
    h0_ref  : VMEM f32[1, Hp]     initial hidden state (zero-padded)
    c0_ref  : VMEM f32[1, Hp]     initial cell state   (zero-padded)
    out_ref : VMEM f32[S, Hp]     per-step hidden states (written back once at kernel end)
    hn_ref  : VMEM f32[1, Hp]     final hidden state
    cn_ref  : VMEM f32[1, Hp]     final cell state
    """
    w = whh_ref[...]                                       # resident (Hp, 4*Hp)

    def step(t, carry):
        h, c = carry                                       # (1, Hp) each
        # Recurrent projection only: (1, Hp) @ (Hp, 4*Hp) on the MXU, plus the hoisted Xg[t].
        gates = xg_ref[pl.ds(t, 1), :] + jnp.dot(
            h, w, preferred_element_type=jnp.float32)      # (1, 4*Hp)

        # Gate slices are whole 128-lane vregs (Hp == 128): no cross-lane movement.
        i_g = jax.nn.sigmoid(gates[:, 0 * hp:1 * hp])
        f_g = jax.nn.sigmoid(gates[:, 1 * hp:2 * hp])
        g_g = jnp.tanh(gates[:, 2 * hp:3 * hp])
        o_g = jax.nn.sigmoid(gates[:, 3 * hp:4 * hp])

        c_new = f_g * c + i_g * g_g
        h_new = o_g * jnp.tanh(c_new)

        out_ref[pl.ds(t, 1), :] = h_new                    # VMEM-resident output block
        return (h_new, c_new)

    h, c = lax.fori_loop(0, seq_len, step, (h0_ref[...], c0_ref[...]),
                         unroll=(seq_len <= 32))
    hn_ref[...] = h
    cn_ref[...] = c


# --------------------------------------------------------------------------------------
# Parameter preparation (one-time): gate-padded, lane-dense weight layout.
# --------------------------------------------------------------------------------------
def prepare_params(raw):
    """Pad hidden dim to a multiple of 128 and give each LSTM gate its own 128-lane slab."""
    V, H = raw["embedding"].shape
    Hp = max(_round_up(H, LANE), LANE)

    emb = jnp.zeros((V, Hp), jnp.float32).at[:, :H].set(raw["embedding"])

    def pad_w(w_pt):                                       # w_pt: (4H, H), PyTorch layout
        wt = jnp.asarray(w_pt, jnp.float32).T              # (H, 4H)
        out = jnp.zeros((Hp, 4 * Hp), jnp.float32)
        for k in range(4):                                 # gate k -> lanes [k*Hp, k*Hp+H)
            out = out.at[:H, k * Hp:k * Hp + H].set(wt[:, k * H:(k + 1) * H])
        return out

    b_comb = raw["b_ih"] + raw["b_hh"]                     # (4H,)
    b_pad = jnp.zeros((4 * Hp,), jnp.float32)
    for k in range(4):
        b_pad = b_pad.at[k * Hp:k * Hp + H].set(b_comb[k * H:(k + 1) * H])

    return {
        "embedding": emb,                                  # (V, Hp)
        "w_ih_t": pad_w(raw["w_ih"]),                      # (Hp, 4*Hp)
        "w_hh_t": pad_w(raw["w_hh"]),                      # (Hp, 4*Hp)
        "b": b_pad.reshape(1, 4 * Hp),                     # (1, 4*Hp)
        "H": int(H),                                       # static python ints
        "Hp": int(Hp),
    }


# --------------------------------------------------------------------------------------
# Forward wrappers.
# --------------------------------------------------------------------------------------
@functools.partial(jax.jit, static_argnames=("h_dim", "hp"))
def _forward_seq_impl(tokens, h0, c0, emb, w_ih_t, w_hh_t, b, *, h_dim, hp):
    S = tokens.shape[0]
    V = emb.shape[0]
    tok = jnp.clip(tokens.astype(jnp.int32), 0, V - 1)     # guard against OOB ids

    # Hoisted, batched input-side projection: one (S,Hp)@(Hp,4Hp) MXU matmul for the whole
    # sequence (done in plain XLA per the perf review; the gather is a cheap jnp.take).
    x = jnp.take(emb, tok, axis=0)                         # (S, Hp)
    xg = jnp.dot(x, w_ih_t, preferred_element_type=jnp.float32) + b   # (S, 4*Hp)

    h0p = jnp.zeros((1, hp), jnp.float32).at[:, :h_dim].set(h0.reshape(1, h_dim))
    c0p = jnp.zeros((1, hp), jnp.float32).at[:, :h_dim].set(c0.reshape(1, h_dim))

    kernel = functools.partial(_lstm_recurrence_kernel, seq_len=S, hp=hp)

    out_pad, hn, cn = pl.pallas_call(
        kernel,
        out_shape=(
            jax.ShapeDtypeStruct((S, hp), jnp.float32),
            jax.ShapeDtypeStruct((1, hp), jnp.float32),
            jax.ShapeDtypeStruct((1, hp), jnp.float32),
        ),
        grid_spec=pltpu.PrefetchScalarGridSpec(
            num_scalar_prefetch=0,
            grid=(1,),                                     # single invocation; loop is in-kernel
            in_specs=[
                pl.BlockSpec((S, 4 * hp), lambda i: (0, 0)),
                pl.BlockSpec((hp, 4 * hp), lambda i: (0, 0)),
                pl.BlockSpec((1, hp), lambda i: (0, 0)),
                pl.BlockSpec((1, hp), lambda i: (0, 0)),
            ],
            out_specs=(
                pl.BlockSpec((S, hp), lambda i: (0, 0)),
                pl.BlockSpec((1, hp), lambda i: (0, 0)),
                pl.BlockSpec((1, hp), lambda i: (0, 0)),
            ),
        ),
        compiler_params=pltpu.CompilerParams(
            dimension_semantics=("arbitrary",),
        ),
    )(xg, w_hh_t, h0p, c0p)

    outputs = out_pad[:, :h_dim].reshape(S, 1, h_dim)
    h_n = hn[:, :h_dim].reshape(1, 1, h_dim)
    c_n = cn[:, :h_dim].reshape(1, 1, h_dim)
    return outputs, (h_n, c_n)


def encoder_rnn_forward_seq(tokens, hidden, prepared):
    """Run the encoder over a whole token sequence (one fused recurrence kernel).

    tokens : int32[S];  hidden : (h0, c0) each f32[1, 1, H]
    returns (outputs f32[S, 1, H], (h f32[1, 1, H], c f32[1, 1, H]))
    """
    h0, c0 = hidden
    return _forward_seq_impl(
        tokens, h0, c0,
        prepared["embedding"], prepared["w_ih_t"], prepared["w_hh_t"], prepared["b"],
        h_dim=prepared["H"], hp=prepared["Hp"])


def encoder_rnn_forward(token, hidden, prepared):
    """Exact analogue of EncoderRNN.forward: one token id -> (output (1,1,H), (h, c))."""
    tokens = jnp.asarray(token, jnp.int32).reshape(1)
    outputs, (h_n, c_n) = encoder_rnn_forward_seq(tokens, hidden, prepared)
    return outputs[0:1], (h_n, c_n)


# --------------------------------------------------------------------------------------
# Init + pure-JAX reference.
# --------------------------------------------------------------------------------------
def init_params(key, input_size, hidden_size):
    """Deterministic parameter init (PyTorch-like uniform(+-1/sqrt(H)), normal embedding)."""
    k_emb, k_wih, k_whh, k_bih, k_bhh = jax.random.split(key, 5)
    bound = 1.0 / jnp.sqrt(hidden_size)
    return {
        "embedding": jax.random.normal(k_emb, (input_size, hidden_size), jnp.float32),
        "w_ih": jax.random.uniform(k_wih, (4 * hidden_size, hidden_size),
                                   jnp.float32, -bound, bound),
        "w_hh": jax.random.uniform(k_whh, (4 * hidden_size, hidden_size),
                                   jnp.float32, -bound, bound),
        "b_ih": jax.random.uniform(k_bih, (4 * hidden_size,), jnp.float32, -bound, bound),
        "b_hh": jax.random.uniform(k_bhh, (4 * hidden_size,), jnp.float32, -bound, bound),
    }


def _reference_forward_seq(tokens, hidden, raw):
    """Plain-JAX reference: run the PyTorch-equivalent LSTM step token by token."""
    h0, c0 = hidden
    H = raw["w_ih"].shape[1]
    h = h0.reshape(1, H)
    c = c0.reshape(1, H)
    outs = []
    for t in range(tokens.shape[0]):
        x = raw["embedding"][tokens[t]].reshape(1, H)
        gates = (x @ raw["w_ih"].T + h @ raw["w_hh"].T + raw["b_ih"] + raw["b_hh"])
        i = jax.nn.sigmoid(gates[:, 0 * H:1 * H])
        f = jax.nn.sigmoid(gates[:, 1 * H:2 * H])
        g = jnp.tanh(gates[:, 2 * H:3 * H])
        o = jax.nn.sigmoid(gates[:, 3 * H:4 * H])
        c = f * c + i * g
        h = o * jnp.tanh(c)
        outs.append(h)
    outputs = jnp.stack(outs, axis=0).reshape(-1, 1, H)
    return outputs, (h.reshape(1, 1, H), c.reshape(1, 1, H))


if __name__ == "__main__":
    INPUT_SIZE = 16   # vocab size
    HIDDEN = 32
    LAYERS = 1
    SEQ = 8

    key = jax.random.PRNGKey(0)
    raw_params = init_params(key, INPUT_SIZE, HIDDEN)
    prepared = prepare_params(raw_params)

    # initHidden(): zeros of shape (layers, 1, hidden)
    h0 = jnp.zeros((LAYERS, 1, HIDDEN), jnp.float32)
    c0 = jnp.zeros((LAYERS, 1, HIDDEN), jnp.float32)

    # 1) Exact module forward: single token.
    token = jnp.array([3], dtype=jnp.int32)
    output, (h_new, c_new) = encoder_rnn_forward(token, (h0, c0), prepared)
    jax.block_until_ready((output, h_new, c_new))

    ref_out, (ref_h, ref_c) = _reference_forward_seq(token, (h0, c0), raw_params)
    assert jnp.allclose(output, ref_out, atol=1e-5), "single-token output mismatch"
    assert jnp.allclose(h_new, ref_h, atol=1e-5), "single-token h mismatch"
    assert jnp.allclose(c_new, ref_c, atol=1e-5), "single-token c mismatch"

    # 2) Fused-sequence version (equivalent to calling forward() in a Python loop).
    tokens = jax.random.randint(jax.random.PRNGKey(1), (SEQ,), 0, INPUT_SIZE, dtype=jnp.int32)
    seq_out, (seq_h, seq_c) = encoder_rnn_forward_seq(tokens, (h0, c0), prepared)
    jax.block_until_ready((seq_out, seq_h, seq_c))

    ref_seq_out, (ref_seq_h, ref_seq_c) = _reference_forward_seq(tokens, (h0, c0), raw_params)
    assert jnp.allclose(seq_out, ref_seq_out, atol=1e-5), "sequence outputs mismatch"
    assert jnp.allclose(seq_h, ref_seq_h, atol=1e-5), "sequence h mismatch"
    assert jnp.allclose(seq_c, ref_seq_c, atol=1e-5), "sequence c mismatch"

    print("KERNEL_OK")
</pallas_src>

<mosaic_0001>
module attributes {stable_mosaic.version = 11 : i64} {
  func.func @_lstm_recurrence_kernel(%arg0: i32, %arg1: memref<1x512xf32, #tpu.memory_space<vmem>>, %arg2: memref<128x512xf32, #tpu.memory_space<vmem>>, %arg3: memref<1x128xf32, #tpu.memory_space<vmem>>, %arg4: memref<1x128xf32, #tpu.memory_space<vmem>>, %arg5: memref<1x128xf32, #tpu.memory_space<vmem>>, %arg6: memref<1x128xf32, #tpu.memory_space<vmem>>, %arg7: memref<1x128xf32, #tpu.memory_space<vmem>>) attributes {dimension_semantics = [#tpu.dimension_semantics<arbitrary>], iteration_bounds = array<i64: 1>, scalar_prefetch = 0 : i64, scratch_operands = 0 : i64, tpu.core_type = #tpu.core_type<tc>, window_params = [{pipeline_mode = #tpu.pipeline_mode<synchronous>, transform_indices = @transform_0, window_bounds = array<i64: 1, 512>}, {pipeline_mode = #tpu.pipeline_mode<synchronous>, transform_indices = @transform_1, window_bounds = array<i64: 128, 512>}, {pipeline_mode = #tpu.pipeline_mode<synchronous>, transform_indices = @transform_2, window_bounds = array<i64: 1, 128>}, {pipeline_mode = #tpu.pipeline_mode<synchronous>, transform_indices = @transform_3, window_bounds = array<i64: 1, 128>}, {pipeline_mode = #tpu.pipeline_mode<synchronous>, transform_indices = @transform_4, window_bounds = array<i64: 1, 128>}, {pipeline_mode = #tpu.pipeline_mode<synchronous>, transform_indices = @transform_5, window_bounds = array<i64: 1, 128>}, {pipeline_mode = #tpu.pipeline_mode<synchronous>, transform_indices = @transform_6, window_bounds = array<i64: 1, 128>}]} {
    %c0 = arith.constant 0 : index
    %c0_0 = arith.constant 0 : index
    %0 = vector.load %arg2[%c0, %c0_0] : memref<128x512xf32, #tpu.memory_space<vmem>>, vector<128x512xf32>
    %c0_1 = arith.constant 0 : index
    %c0_2 = arith.constant 0 : index
    %1 = vector.load %arg3[%c0_1, %c0_2] : memref<1x128xf32, #tpu.memory_space<vmem>>, vector<1x128xf32>
    %c0_3 = arith.constant 0 : index
    %c0_4 = arith.constant 0 : index
    %2 = vector.load %arg4[%c0_3, %c0_4] : memref<1x128xf32, #tpu.memory_space<vmem>>, vector<1x128xf32>
    %c0_i32 = arith.constant 0 : i32
    %3 = arith.index_cast %c0_i32 : i32 to index
    %c0_5 = arith.constant 0 : index
    %4 = vector.load %arg1[%3, %c0_5] : memref<1x512xf32, #tpu.memory_space<vmem>>, vector<1x512xf32>
    %cst = arith.constant dense<0.000000e+00> : vector<1x512xf32>
    %5 = tpu.matmul %1, %0, %cst {dimension_numbers = #tpu.dot_dimension_numbers<[1], [0], [0], [1], [0, 0, 1, 1], [], []>} : vector<1x128xf32>, vector<128x512xf32>, vector<1x512xf32> -> vector<1x512xf32>
    %6 = arith.addf %4, %5 : vector<1x512xf32>
    %7 = vector.extract_strided_slice %6 {offsets = [0, 0], sizes = [1, 128], strides = [1, 1]} : vector<1x512xf32> to vector<1x128xf32>
    %8 = arith.negf %7 : vector<1x128xf32>
    %9 = math.exp %8 : vector<1x128xf32>
    %cst_6 = arith.constant 1.000000e+00 : f32
    %10 = vector.broadcast %cst_6 : f32 to vector<1x128xf32>
    %11 = arith.addf %10, %9 : vector<1x128xf32>
    %12 = arith.divf %10, %11 : vector<1x128xf32>
    %13 = vector.extract_strided_slice %6 {offsets = [0, 128], sizes = [1, 128], strides = [1, 1]} : vector<1x512xf32> to vector<1x128xf32>
    %14 = arith.negf %13 : vector<1x128xf32>
    %15 = math.exp %14 : vector<1x128xf32>
    %cst_7 = arith.constant 1.000000e+00 : f32
    %16 = vector.broadcast %cst_7 : f32 to vector<1x128xf32>
    %17 = arith.addf %16, %15 : vector<1x128xf32>
    %18 = arith.divf %16, %17 : vector<1x128xf32>
    %19 = vector.extract_strided_slice %6 {offsets = [0, 256], sizes = [1, 128], strides = [1, 1]} : vector<1x512xf32> to vector<1x128xf32>
    %20 = math.tanh %19 : vector<1x128xf32>
    %21 = vector.extract_strided_slice %6 {offsets = [0, 384], sizes = [1, 128], strides = [1, 1]} : vector<1x512xf32> to vector<1x128xf32>
    %22 = arith.negf %21 : vector<1x128xf32>
    %23 = math.exp %22 : vector<1x128xf32>
    %cst_8 = arith.constant 1.000000e+00 : f32
    %24 = vector.broadcast %cst_8 : f32 to vector<1x128xf32>
    %25 = arith.addf %24, %23 : vector<1x128xf32>
    %26 = arith.divf %24, %25 : vector<1x128xf32>
    %27 = arith.mulf %18, %2 : vector<1x128xf32>
    %28 = arith.mulf %12, %20 : vector<1x128xf32>
    %29 = arith.addf %27, %28 : vector<1x128xf32>
    %30 = math.tanh %29 : vector<1x128xf32>
    %31 = arith.mulf %26, %30 : vector<1x128xf32>
    %32 = arith.index_cast %c0_i32 : i32 to index
    %c0_9 = arith.constant 0 : index
    %33 = vector.load %arg5[%32, %c0_9] : memref<1x128xf32, #tpu.memory_space<vmem>>, vector<1x128xf32>
    tpu.vector_store %arg5[%32, %c0_9], %31 {strides = array<i32>} : memref<1x128xf32, #tpu.memory_space<vmem>>, vector<1x128xf32>,
    %c1_i32 = arith.constant 1 : i32
    %c0_10 = arith.constant 0 : index
    %c0_11 = arith.constant 0 : index
    %34 = vector.load %arg6[%c0_10, %c0_11] : memref<1x128xf32, #tpu.memory_space<vmem>>, vector<1x128xf32>
    tpu.vector_store %arg6[%c0_10, %c0_11], %31 {strides = array<i32>} : memref<1x128xf32, #tpu.memory_space<vmem>>, vector<1x128xf32>,
    %c0_12 = arith.constant 0 : index
    %c0_13 = arith.constant 0 : index
    %35 = vector.load %arg7[%c0_12, %c0_13] : memref<1x128xf32, #tpu.memory_space<vmem>>, vector<1x128xf32>
    tpu.vector_store %arg7[%c0_12, %c0_13], %29 {strides = array<i32>} : memref<1x128xf32, #tpu.memory_space<vmem>>, vector<1x128xf32>,
    return
  }
  func.func @transform_0(%arg0: i32) -> (i32, i32) {
    %c0_i32 = arith.constant 0 : i32
    %c0_i32_0 = arith.constant 0 : i32
    %c0_i32_1 = arith.constant 0 : i32
    return %c0_i32, %c0_i32_0 : i32, i32
  }
  func.func @transform_1(%arg0: i32) -> (i32, i32) {
    %c0_i32 = arith.constant 0 : i32
    %c0_i32_0 = arith.constant 0 : i32
    %c0_i32_1 = arith.constant 0 : i32
    return %c0_i32, %c0_i32_0 : i32, i32
  }
  func.func @transform_2(%arg0: i32) -> (i32, i32) {
    %c0_i32 = arith.constant 0 : i32
    %c0_i32_0 = arith.constant 0 : i32
    %c0_i32_1 = arith.constant 0 : i32
    return %c0_i32, %c0_i32_0 : i32, i32
  }
  func.func @transform_3(%arg0: i32) -> (i32, i32) {
    %c0_i32 = arith.constant 0 : i32
    %c0_i32_0 = arith.constant 0 : i32
    %c0_i32_1 = arith.constant 0 : i32
    return %c0_i32, %c0_i32_0 : i32, i32
  }
  func.func @transform_4(%arg0: i32) -> (i32, i32) {
    %c0_i32 = arith.constant 0 : i32
    %c0_i32_0 = arith.constant 0 : i32
    %c0_i32_1 = arith.constant 0 : i32
    return %c0_i32, %c0_i32_0 : i32, i32
  }
  func.func @transform_5(%arg0: i32) -> (i32, i32) {
    %c0_i32 = arith.constant 0 : i32
    %c0_i32_0 = arith.constant 0 : i32
    %c0_i32_1 = arith.constant 0 : i32
    return %c0_i32, %c0_i32_0 : i32, i32
  }
  func.func @transform_6(%arg0: i32) -> (i32, i32) {
    %c0_i32 = arith.constant 0 : i32
    %c0_i32_0 = arith.constant 0 : i32
    %c0_i32_1 = arith.constant 0 : i32
    return %c0_i32, %c0_i32_0 : i32, i32
  }
}

</mosaic_0001>

<bundles_post_ra>
// kernel: _forward_seq_impl.1
= control target key start
LH: loop header
LB: loop body
LE: loop exit
PB: predicated region body
PF: predicated region fallthrough
CT: control target
= control target key end

     0   :  { %v390_v3 = vmov 0.0   ;;  %s637_s1 = inlined_call_operand.vmem [shape: f32[128,512], index: 1, kind: input, shape index: {}]   ;;  %s638_s2 = inlined_call_operand.vmem [shape: f32[1,128], index: 2, kind: input, shape index: {}]   ;;  %s639_s0 = inlined_call_operand.vmem [shape: f32[1,512], index: 0, kind: input, shape index: {}]   ;;  %s640_s3 = inlined_call_operand.vmem [shape: f32[1,128], index: 3, kind: input, shape index: {}]   ;;  %s641_s6 = inlined_call_operand.vmem [shape: f32[1,128], index: 6, kind: output, shape index: {2}]   ;;  %s642_s4 = inlined_call_operand.vmem [shape: f32[1,128], index: 4, kind: output, shape index: {0}]   ;;  %s643_s5 = inlined_call_operand.vmem [shape: f32[1,128], index: 5, kind: output, shape index: {1}]  }
   0x1   :  { %v21_v0 = vld [vmem:[%s637_s1 + $0x8] sm:$0xff]  ;;  %v23_v2 = vld [vmem:[%s637_s1 + $0x18] sm:$0xff]  ;;  %151 = vmatprep.mubr.f32.mxu0 %v390_v3  ;;  %222 = vmatprep.mubr.f32.mxu1 %v390_v3  ;;  %v20_v6 = vld [vmem:[%s637_s1] sm:$0xff] }
   0x2   :  { %v25_v1 = vld [vmem:[%s637_s1 + $0x28] sm:$0xff]  ;;  %v27_v5 = vld [vmem:[%s637_s1 + $0x38] sm:$0xff]  ;;  %v24_v7 = vld [vmem:[%s637_s1 + $0x20] sm:$0xff] }
   0x3   :  { %v308_v4 = vpack.c.bf16 %v25_v1, %v21_v0  ;;  %v340_v8 = vpack.c.bf16 %v27_v5, %v23_v2  ;;  %v310_v9 = vpack.c.bf16 %v24_v7, %v20_v6  ;;  %v22_v10 = vld [vmem:[%s637_s1 + $0x10] sm:$0xff]  ;;  %v29_v12 = vld [vmem:[%s637_s1 + $0x48] sm:$0xff]  ;;  %v31_v15 = vld [vmem:[%s637_s1 + $0x58] sm:$0xff] }
   0x4   :  { %v26_v11 = vld [vmem:[%s637_s1 + $0x30] sm:$0xff]  ;;  %v33_v14 = vld [vmem:[%s637_s1 + $0x68] sm:$0xff]  ;;  %v35_v16 = vld [vmem:[%s637_s1 + $0x78] sm:$0xff] }
   0x5   :  { %309 = vmatprep.subr.bf16.mxu0 %v308_v4  ;;  %v342_v13 = vpack.c.bf16 %v26_v11, %v22_v10  ;;  %341 = vmatprep.subr.bf16.mxu1 %v340_v8  ;;  %v312_v17 = vpack.c.bf16 %v33_v14, %v29_v12  ;;  %v344_v18 = vpack.c.bf16 %v35_v16, %v31_v15  ;;  %v28_v19 = vld [vmem:[%s637_s1 + $0x40] sm:$0xff]  ;;  %v30_v21 = vld [vmem:[%s637_s1 + $0x50] sm:$0xff]  ;;  %v37_v24 = vld [vmem:[%s637_s1 + $0x88] sm:$0xff] }
   0x6   :  { %311 = vmatpush1.bf16.msra.mxu0 %v310_v9  ;;  %v32_v20 = vld [vmem:[%s637_s1 + $0x60] sm:$0xff]  ;;  %v34_v23 = vld [vmem:[%s637_s1 + $0x70] sm:$0xff]  ;;  %v41_v25 = vld [vmem:[%s637_s1 + $0xa8] sm:$0xff] }
   0x7   :  { %343 = vmatpush1.bf16.msra.mxu1 %v342_v13  ;;  %v314_v22 = vpack.c.bf16 %v32_v20, %v28_v19  ;;  %313 = vmatprep.subr.bf16.mxu0 %v312_v17  ;;  %v346_v26 = vpack.c.bf16 %v34_v23, %v30_v21  ;;  %v316_v27 = vpack.c.bf16 %v41_v25, %v37_v24  ;;  %v39_v28 = vld [vmem:[%s637_s1 + $0x98] sm:$0xff]  ;;  %v36_v30 = vld [vmem:[%s637_s1 + $0x80] sm:$0xff]  ;;  %v38_v33 = vld [vmem:[%s637_s1 + $0x90] sm:$0xff] }
   0x8   :  { %345 = vmatprep.subr.bf16.mxu1 %v344_v18  ;;  %v43_v29 = vld [vmem:[%s637_s1 + $0xb8] sm:$0xff]  ;;  %v40_v32 = vld [vmem:[%s637_s1 + $0xa0] sm:$0xff]  ;;  %v42_v34 = vld [vmem:[%s637_s1 + $0xb0] sm:$0xff] }
   0x9   :  { %v348_v31 = vpack.c.bf16 %v43_v29, %v39_v28  ;;  %v318_v35 = vpack.c.bf16 %v40_v32, %v36_v30  ;;  %v45_v36 = vld [vmem:[%s637_s1 + $0xc8] sm:$0xff]  ;;  %v47_v38 = vld [vmem:[%s637_s1 + $0xd8] sm:$0xff]  ;;  %v350_v39 = vpack.c.bf16 %v42_v34, %v38_v33  ;;  %v44_v42 = vld [vmem:[%s637_s1 + $0xc0] sm:$0xff]  ;;  %v391_v34 = vmov 1966171168  }
   0xa   :  { %315 = vmatpush1.bf16.msra.mxu0 %v314_v22  ;;  %v49_v37 = vld [vmem:[%s637_s1 + $0xe8] sm:$0xff]  ;;  %v51_v41 = vld [vmem:[%s637_s1 + $0xf8] sm:$0xff]  ;;  %v48_v43 = vld [vmem:[%s637_s1 + $0xe0] sm:$0xff] }
   0xb   :  { %347 = vmatpush1.bf16.msra.mxu1 %v346_v26  ;;  %317 = vmatprep.subr.bf16.mxu0 %v316_v27  ;;  %v320_v40 = vpack.c.bf16 %v49_v37, %v45_v36  ;;  %v352_v44 = vpack.c.bf16 %v51_v41, %v47_v38  ;;  %v46_v45 = vld [vmem:[%s637_s1 + $0xd0] sm:$0xff]  ;;  %v53_v47 = vld [vmem:[%s637_s1 + $0x108] sm:$0xff]  ;;  %v55_v49 = vld [vmem:[%s637_s1 + $0x118] sm:$0xff]  ;;  %v322_v51 = vpack.c.bf16 %v48_v43, %v44_v42  ;;  %v238_v36 = vlaneseq }
   0xc   :  { %349 = vmatprep.subr.bf16.mxu1 %v348_v31  ;;  %v50_v46 = vld [vmem:[%s637_s1 + $0xf0] sm:$0xff]  ;;  %v57_v48 = vld [vmem:[%s637_s1 + $0x128] sm:$0xff]  ;;  %v59_v50 = vld [vmem:[%s637_s1 + $0x138] sm:$0xff] }
   0xd   :  { %v354_v52 = vpack.c.bf16 %v50_v46, %v46_v45  ;;  %v324_v53 = vpack.c.bf16 %v57_v48, %v53_v47  ;;  %v52_v54 = vld [vmem:[%s637_s1 + $0x100] sm:$0xff]  ;;  %v54_v56 = vld [vmem:[%s637_s1 + $0x110] sm:$0xff]  ;;  %v356_v57 = vpack.c.bf16 %v59_v50, %v55_v49  ;;  %v61_v59 = vld [vmem:[%s637_s1 + $0x148] sm:$0xff]  ;;  %v239_v38 = vshrl.u32 %v238_v36, 7 }
   0xe   :  { %319 = vmatpush1.bf16.msra.mxu0 %v318_v35  ;;  %v56_v55 = vld [vmem:[%s637_s1 + $0x120] sm:$0xff]  ;;  %v58_v58 = vld [vmem:[%s637_s1 + $0x130] sm:$0xff]  ;;  %v65_v60 = vld [vmem:[%s637_s1 + $0x168] sm:$0xff]  ;;  %v236_v35 = vunpack.c.l.s4 %v391_v34 }
   0xf   :  { %351 = vmatpush1.bf16.msra.mxu1 %v350_v39  ;;  %321 = vmatprep.subr.bf16.mxu0 %v320_v40  ;;  %v63_v61 = vld [vmem:[%s637_s1 + $0x158] sm:$0xff]  ;;  %v326_v63 = vpack.c.bf16 %v56_v55, %v52_v54  ;;  %v358_v0 = vpack.c.bf16 %v58_v58, %v54_v56  ;;  %v328_v1 = vpack.c.bf16 %v65_v60, %v61_v59  ;;  %v60_v2 = vld [vmem:[%s637_s1 + $0x140] sm:$0xff]  ;;  %v62_v4 = vld [vmem:[%s637_s1 + $0x150] sm:$0xff] }
  0x10   :  { %353 = vmatprep.subr.bf16.mxu1 %v352_v44  ;;  %v67_v62 = vld [vmem:[%s637_s1 + $0x178] sm:$0xff]  ;;  %v64_v3 = vld [vmem:[%s637_s1 + $0x160] sm:$0xff]  ;;  %v66_v6 = vld [vmem:[%s637_s1 + $0x170] sm:$0xff]  ;;  %v237_v37 = vunpack.c.0.s8 %v236_v35 }
  0x11   :  { %v360_v5 = vpack.c.bf16 %v67_v62, %v63_v61  ;;  %v69_v7 = vld [vmem:[%s637_s1 + $0x188] sm:$0xff]  ;;  %v71_v9 = vld [vmem:[%s637_s1 + $0x198] sm:$0xff]  ;;  %v330_v11 = vpack.c.bf16 %v64_v3, %v60_v2  ;;  %v362_v12 = vpack.c.bf16 %v66_v6, %v62_v4  ;;  %v68_v14 = vld [vmem:[%s637_s1 + $0x180] sm:$0xff] }
  0x12   :  { %323 = vmatpush1.bf16.msra.mxu0 %v322_v51  ;;  %v73_v8 = vld [vmem:[%s637_s1 + $0x1a8] sm:$0xff]  ;;  %v75_v10 = vld [vmem:[%s637_s1 + $0x1b8] sm:$0xff]  ;;  %v72_v15 = vld [vmem:[%s637_s1 + $0x1a0] sm:$0xff]  ;;  %v240_v40 = vsub.s32 %v237_v37, %v239_v38 }
  0x13   :  { %355 = vmatpush1.bf16.msra.mxu1 %v354_v52  ;;  %325 = vmatprep.subr.bf16.mxu0 %v324_v53  ;;  %v332_v13 = vpack.c.bf16 %v73_v8, %v69_v7  ;;  %v70_v16 = vld [vmem:[%s637_s1 + $0x190] sm:$0xff]  ;;  %v364_v17 = vpack.c.bf16 %v75_v10, %v71_v9  ;;  %v77_v19 = vld [vmem:[%s637_s1 + $0x1c8] sm:$0xff]  ;;  %v79_v21 = vld [vmem:[%s637_s1 + $0x1d8] sm:$0xff]  ;;  %v334_v23 = vpack.c.bf16 %v72_v15, %v68_v14 }
  0x14   :  { %357 = vmatprep.subr.bf16.mxu1 %v356_v57  ;;  %v74_v18 = vld [vmem:[%s637_s1 + $0x1b0] sm:$0xff]  ;;  %v81_v20 = vld [vmem:[%s637_s1 + $0x1e8] sm:$0xff]  ;;  %v83_v22 = vld [vmem:[%s637_s1 + $0x1f8] sm:$0xff] }
  0x15   :  { %v366_v24 = vpack.c.bf16 %v74_v18, %v70_v16  ;;  %v336_v25 = vpack.c.bf16 %v81_v20, %v77_v19  ;;  %v76_v26 = vld [vmem:[%s637_s1 + $0x1c0] sm:$0xff]  ;;  %v368_v28 = vpack.c.bf16 %v83_v22, %v79_v21  ;;  %v78_v29 = vld [vmem:[%s637_s1 + $0x1d0] sm:$0xff] }
  0x16   :  { %327 = vmatpush1.bf16.msra.mxu0 %v326_v63  ;;  %v80_v27 = vld [vmem:[%s637_s1 + $0x1e0] sm:$0xff]  ;;  %v82_v30 = vld [vmem:[%s637_s1 + $0x1f0] sm:$0xff] }
  0x17   :  { %359 = vmatpush1.bf16.msra.mxu1 %v358_v0  ;;  %329 = vmatprep.subr.bf16.mxu0 %v328_v1  ;;  %v338_v31 = vpack.c.bf16 %v80_v27, %v76_v26  ;;  %v370_v32 = vpack.c.bf16 %v82_v30, %v78_v29  ;;  %v84_v33 = vld [vmem:[%s638_s2] sm:$0x1] }
  0x18   :  { %361 = vmatprep.subr.bf16.mxu1 %v360_v5  ;;  %v86_v49 = vld [vmem:[%s639_s0] sm:$0xf] }
  0x19   :  { %v85_v0 = vld [vmem:[%s640_s3] sm:$0x1] }
  0x1a   :  { %331 = vmatpush1.bf16.msra.mxu0 %v330_v11 }
  0x1b   :  { %363 = vmatpush1.bf16.msra.mxu1 %v362_v12  ;;  %333 = vmatprep.subr.bf16.mxu0 %v332_v13 }
  0x1c   :  { %365 = vmatprep.subr.bf16.mxu1 %v364_v17 }
  0x1e   :  { %335 = vmatpush1.bf16.msra.mxu0 %v334_v23 }
  0x1f   :  { %367 = vmatpush1.bf16.msra.mxu1 %v366_v24  ;;  %337 = vmatprep.subr.bf16.mxu0 %v336_v25 }
  0x20   :  { %369 = vmatprep.subr.bf16.mxu1 %v368_v28 }
  0x22   :  { %339 = vmatpush1.bf16.msra.mxu0 %v338_v31 }
  0x23   :  { %371 = vmatpush1.bf16.msra.mxu1 %v370_v32 }
  0x25   :  { %152 = vmatmul.mubr.f32.vlgmr.msra.gmra.mrb[0].mxu0 %v84_v33 }
  0x26   :  { %223 = vmatmul.mubr.f32.vlgmr.msra.gmra.mrb[0].mxu1 %v84_v33 }
  0xf8   :  { %v153_v39 = vpop.f32.mrb[0].mxu0 }
  0xf9   :  { %v224_v41 = vpop.f32.mrb[0].mxu1  ;;  %v155_v42 = vpop.f32.mrb[1].mxu0 }
  0xfa   :  { %v233_v43 = vcombine.low %v153_v39, %v155_v42  ;;  %v226_v44 = vpop.f32.mrb[1].mxu1 }
  0xfb   :  { %v234_v45 = vcombine.low %v224_v41, %v226_v44 }
  0xfc   :  { %v241_v46 = vrot.slane %v233_v43, %v240_v40 }
  0xfd   :  { %v248_v47 = vrot.slane %v234_v45, %v240_v40 }
  0xff   :  { %v249_v48 = vcombine.low %v241_v46, %v248_v47 }
 0x101   :  { %v256_v50 = vrot.slane %v249_v48, %v240_v40 }
 0x103   :  { %v258_v51 = vadd.f32 %v256_v50, %v86_v49 }
 0x105   :  { %v305_v52 = vmul.f32 -1.442695, %v258_v51  ;;  %v266_v53 = vrot.slane %v258_v51, 1  ;;  %v277_v55 = vrot.slane %v258_v51, 3  ;;  %v274_v58 = vrot.slane %v258_v51, 2 }
 0x107   :  { %374 = vpow2.f32 %v305_v52  ;;  %v306_v54 = vmul.f32 -1.442695, %v266_v53  ;;  %v307_v56 = vmul.f32 -1.442695, %v277_v55 }
 0x109   :  { %376 = vpow2.f32 %v306_v54 }
 0x10a   :  { %378 = vpow2.f32 %v307_v56 }
 0x111   :  { %v375_v57 = vpop.eup %374 }
 0x112   :  { %v262_v59 = vadd.f32 1.0, %v375_v57 }
 0x113   :  { %v377_v60 = vpop.eup %376 }
 0x114   :  { %380 = vrcp.f32 %v262_v59  ;;  %v271_v61 = vadd.f32 1.0, %v377_v60  ;;  %v379_v62 = vpop.eup %378 }
 0x115   :  { %382 = vtanh.f32 %v274_v58  ;;  %v282_v3 = vadd.f32 1.0, %v379_v62 }
 0x116   :  { %384 = vrcp.f32 %v271_v61 }
 0x117   :  { %386 = vrcp.f32 %v282_v3 }
 0x11e   :  { %v381_v63 = vpop.eup %380 }
 0x11f   :  { %v383_v1 = vpop.eup %382 }
 0x120   :  { %v385_v2 = vpop.eup %384  ;;  %v286_v5 = vmul.f32 %v383_v1, %v381_v63 }
 0x121   :  { %v285_v4 = vmul.f32 %v385_v2, %v85_v0  ;;  %v387_v7 = vpop.eup %386 }
 0x123   :  { %v287_v6 = vadd.f32 %v286_v5, %v285_v4 }
 0x125   :  { %388 = vtanh.f32 %v287_v6  ;;  %292 = vst [vmem:[%s641_s6] sm:$0x1] %v287_v6 }
 0x12f   :  { %v389_v8 = vpop.eup %388 }
 0x130   :  { %v289_v9 = vmul.f32 %v389_v8, %v387_v7 }
 0x132   :  { %290 = vst [vmem:[%s642_s4] sm:$0x1] %v289_v9  ;;  %291 = vst [vmem:[%s643_s5] sm:$0x1] %v289_v9 }

</bundles_post_ra>
